<compile_context>
chip_gen: v7x
topology: tpu7x:2x2x1
jax: 0.10.0
libtpu: 0.0.40
codegen_flags: <defaults>
</compile_context>

<pallas_src>
import functools
import math

import jax
import jax.numpy as jnp
from jax.experimental import pallas as pl
from jax.experimental.pallas import tpu as pltpu


def _bce_dice_partial_kernel(x_ref, t_ref, out_ref, *, rows_valid_last,
                             needs_mask):
    x = x_ref[...].astype(jnp.float32)   # (1, tr, 128); upcast in-kernel
    t = t_ref[...].astype(jnp.float32)   # (1, tr, 128)

    # e feeds both the stable BCE-with-logits and the sigmoid.
    e = jnp.exp(-jnp.abs(x))
    bce = jnp.maximum(x, 0.0) - x * t + jnp.log1p(e)      # stable BCE
    probs = jnp.where(x >= 0.0, 1.0, e) / (1.0 + e)       # == sigmoid(x)

    def write(bce_v, pt_v, p_v, t_v):
        # Sublane-only reduction; the cross-lane reduce happens in JAX glue.
        sums = jnp.concatenate(
            [jnp.sum(bce_v, axis=1, keepdims=True),
             jnp.sum(pt_v, axis=1, keepdims=True),
             jnp.sum(p_v, axis=1, keepdims=True),
             jnp.sum(t_v, axis=1, keepdims=True)],
            axis=1)                                        # (1, 4, 128)
        out_ref[...] = sums.reshape(out_ref.shape)         # single store

    if needs_mask:
        # Only reachable when R > block_rows and R % tr != 0: the final chunk
        # contains whole garbage rows past row `rows_valid_last`.
        last = pl.program_id(1) == pl.num_programs(1) - 1

        @pl.when(jnp.logical_not(last))
        def _():
            write(bce, probs * t, probs, t)

        @pl.when(last)
        def _():
            row = jax.lax.broadcasted_iota(jnp.int32, x.shape, 1)
            valid = row < rows_valid_last
            zero = jnp.zeros_like(x)
            # where-select (not mask-multiply) so garbage OOB rows cannot
            # propagate inf/NaN into the sums.
            bce_m = jnp.where(valid, bce, zero)
            p_m = jnp.where(valid, probs, zero)
            t_m = jnp.where(valid, t, zero)
            write(bce_m, p_m * t_m, p_m, t_m)
    else:
        write(bce, probs * t, probs, t)


def bce_with_logits_dice_loss(logits, target, *, loss_weight=1.0,
                              weight_bce=1.0, weight_dice=1.0, eps=1e-6,
                              block_rows=4096):
    """Reproduces BCEWithLogitsDiceLoss.forward (loss_weight is stored but,
    as in the PyTorch module, NOT applied in forward)."""
    # channel adjustment (matches the PyTorch branch)
    if target.shape[1] != logits.shape[1]:
        target = jnp.mean(target, axis=1, keepdims=True)

    bcast_factor = 1
    if target.shape != logits.shape:
        # TODO(synk): avoid materializing the channel broadcast (reuse target
        # blocks via the index_map); unreachable with valid BCEWithLogitsLoss
        # inputs, so kept simple.
        bcast_factor = logits.shape[1] // target.shape[1]
        target = jnp.broadcast_to(target, logits.shape)

    B = logits.shape[0]
    D = int(math.prod(logits.shape[1:]))

    # Metadata-only reshapes; dtype cast happens inside the kernel.
    x_flat = jnp.reshape(logits, (B, D))
    t_flat = jnp.reshape(target, (B, D))

    R = D // 128            # full 128-lane rows
    d_bulk = R * 128        # 128-aligned bulk handled by the kernel

    if R > 0:
        if d_bulk != D:
            x_bulk = x_flat[:, :d_bulk]
            t_bulk = t_flat[:, :d_bulk]
        else:
            x_bulk = x_flat
            t_bulk = t_flat
        x3 = jnp.reshape(x_bulk, (B, R, 128))
        t3 = jnp.reshape(t_bulk, (B, R, 128))

        block_rows = max(8, (int(block_rows) // 8) * 8)
        tr = R if R <= block_rows else block_rows
        n_chunks = pl.cdiv(R, tr)
        needs_mask = (n_chunks * tr != R)
        rows_valid_last = R - (n_chunks - 1) * tr

        kernel = functools.partial(_bce_dice_partial_kernel,
                                   rows_valid_last=rows_valid_last,
                                   needs_mask=needs_mask)

        partials = pl.pallas_call(
            kernel,
            out_shape=jax.ShapeDtypeStruct((B, n_chunks, 4, 128), jnp.float32),
            grid=(B, n_chunks),
            in_specs=[
                pl.BlockSpec((1, tr, 128), lambda b, j: (b, j, 0)),
                pl.BlockSpec((1, tr, 128), lambda b, j: (b, j, 0)),
            ],
            out_specs=pl.BlockSpec((1, 1, 4, 128), lambda b, j: (b, j, 0, 0)),
            compiler_params=pltpu.CompilerParams(
                dimension_semantics=("parallel", "parallel"),
                vmem_limit_bytes=32 * 1024 * 1024),
        )(x3, t3)

        per_batch = jnp.sum(partials, axis=(1, 3))        # (B, 4)
    else:
        per_batch = jnp.zeros((B, 4), jnp.float32)

    if d_bulk != D:
        # Ragged (<128 elements per batch) lane tail in plain JAX glue.
        xt = x_flat[:, d_bulk:].astype(jnp.float32)
        tt = t_flat[:, d_bulk:].astype(jnp.float32)
        et = jnp.exp(-jnp.abs(xt))
        bce_t = jnp.maximum(xt, 0.0) - xt * tt + jnp.log1p(et)
        p_t = jnp.where(xt >= 0.0, 1.0, et) / (1.0 + et)
        tail = jnp.stack([jnp.sum(bce_t, axis=1),
                          jnp.sum(p_t * tt, axis=1),
                          jnp.sum(p_t, axis=1),
                          jnp.sum(tt, axis=1)], axis=1)    # (B, 4)
        per_batch = per_batch + tail

    # BCEWithLogitsLoss(reduction='mean') -> mean over all logits elements.
    loss_bce = jnp.sum(per_batch[:, 0]) / (B * D)
    num = 2.0 * per_batch[:, 1]
    den = per_batch[:, 2] + per_batch[:, 3] / bcast_factor + eps
    loss_dice = 1.0 - jnp.mean(num / den)
    # NOTE: loss_weight intentionally unused, mirroring the PyTorch forward.
    return weight_bce * loss_bce + weight_dice * loss_dice


def _reference(logits, target, *, weight_bce=1.0, weight_dice=1.0, eps=1e-6):
    if target.shape[1] != logits.shape[1]:
        target = jnp.mean(target, axis=1, keepdims=True)
    x = logits.astype(jnp.float32)
    t = target.astype(jnp.float32)
    bce = jnp.mean(jnp.maximum(x, 0.0) - x * t + jnp.log1p(jnp.exp(-jnp.abs(x))))
    probs = jax.nn.sigmoid(x)
    red = tuple(range(1, x.ndim))
    num = 2.0 * jnp.sum(probs * t, axis=red)
    den = jnp.sum(probs, axis=red) + jnp.sum(t, axis=red) + eps
    dice = 1.0 - jnp.mean(num / den)
    return weight_bce * bce + weight_dice * dice


if __name__ == "__main__":
    key = jax.random.PRNGKey(0)
    k1, k2, k3, k4, k5, k6 = jax.random.split(key, 6)

    # 1) aligned case: B=2, C=4, H=W=16 (NCHW), D = 1024 (single chunk,
    #    mask-free, tail-free path).
    logits = jax.random.normal(k1, (2, 4, 16, 16), dtype=jnp.float32)
    target = jax.random.uniform(k2, (2, 4, 16, 16), dtype=jnp.float32)
    loss = jax.block_until_ready(
        bce_with_logits_dice_loss(logits, target, loss_weight=1.0))
    ref = jax.block_until_ready(_reference(logits, target))
    assert jnp.allclose(loss, ref, rtol=1e-4, atol=1e-4), (loss, ref)

    # 2) ragged case (D = 3*17*19 = 969) exercises the JAX lane-tail path
    #    (no padded HBM copy).
    logits2 = jax.random.normal(k3, (2, 3, 17, 19), dtype=jnp.float32)
    target2 = jax.random.uniform(k4, (2, 3, 17, 19), dtype=jnp.float32)
    loss2 = jax.block_until_ready(
        bce_with_logits_dice_loss(logits2, target2, loss_weight=1.0))
    ref2 = jax.block_until_ready(_reference(logits2, target2))
    assert jnp.allclose(loss2, ref2, rtol=1e-4, atol=1e-4), (loss2, ref2)

    # 3) bf16 inputs: halves HBM traffic; kernel upcasts to f32 internally.
    logits3 = logits.astype(jnp.bfloat16)
    target3 = target.astype(jnp.bfloat16)
    loss3 = jax.block_until_ready(
        bce_with_logits_dice_loss(logits3, target3, loss_weight=1.0))
    ref3 = jax.block_until_ready(_reference(logits3, target3))
    assert jnp.allclose(loss3, ref3, rtol=1e-3, atol=1e-3), (loss3, ref3)

    # 4) multi-chunk + masked ragged last chunk (forced with a tiny
    #    block_rows): D = 10*16*16 = 2560 -> R = 20 rows, tr = 8, 3 chunks.
    logits4 = jax.random.normal(k5, (2, 10, 16, 16), dtype=jnp.float32)
    target4 = jax.random.uniform(k6, (2, 10, 16, 16), dtype=jnp.float32)
    loss4 = jax.block_until_ready(
        bce_with_logits_dice_loss(logits4, target4, loss_weight=1.0,
                                  block_rows=8))
    ref4 = jax.block_until_ready(_reference(logits4, target4))
    assert jnp.allclose(loss4, ref4, rtol=1e-4, atol=1e-4), (loss4, ref4)

    print("KERNEL_OK")
</pallas_src>

<mosaic_0001>
module attributes {stable_mosaic.version = 11 : i64} {
  func.func @_bce_dice_partial_kernel(%arg0: i32, %arg1: i32, %arg2: memref<1x8x128xf32, #tpu.memory_space<vmem>>, %arg3: memref<1x8x128xf32, #tpu.memory_space<vmem>>, %arg4: memref<1x1x4x128xf32, #tpu.memory_space<vmem>>) attributes {dimension_semantics = [#tpu.dimension_semantics<parallel>, #tpu.dimension_semantics<parallel>], iteration_bounds = array<i64: 2, 1>, scalar_prefetch = 0 : i64, scratch_operands = 0 : i64, tpu.core_type = #tpu.core_type<tc>, window_params = [{transform_indices = @transform_0, window_bounds = array<i64: 1, 8, 128>}, {transform_indices = @transform_1, window_bounds = array<i64: 1, 8, 128>}, {transform_indices = @transform_2, window_bounds = array<i64: 1, 1, 4, 128>}]} {
    %c0 = arith.constant 0 : index
    %c0_0 = arith.constant 0 : index
    %c0_1 = arith.constant 0 : index
    %0 = vector.load %arg2[%c0, %c0_0, %c0_1] : memref<1x8x128xf32, #tpu.memory_space<vmem>>, vector<1x8x128xf32>
    %c0_2 = arith.constant 0 : index
    %c0_3 = arith.constant 0 : index
    %c0_4 = arith.constant 0 : index
    %1 = vector.load %arg3[%c0_2, %c0_3, %c0_4] : memref<1x8x128xf32, #tpu.memory_space<vmem>>, vector<1x8x128xf32>
    %2 = math.absf %0 : vector<1x8x128xf32>
    %cst = arith.constant 0.000000e+00 : f32
    %3 = vector.broadcast %cst : f32 to vector<1x8x128xf32>
    %4 = arith.subf %3, %2 : vector<1x8x128xf32>
    %5 = math.exp %4 : vector<1x8x128xf32>
    %cst_5 = arith.constant 0.000000e+00 : f32
    %6 = vector.broadcast %cst_5 : f32 to vector<1x8x128xf32>
    %7 = arith.maximumf %0, %6 : vector<1x8x128xf32>
    %8 = arith.mulf %0, %1 : vector<1x8x128xf32>
    %9 = arith.subf %7, %8 : vector<1x8x128xf32>
    %10 = math.log1p %5 : vector<1x8x128xf32>
    %11 = arith.addf %9, %10 : vector<1x8x128xf32>
    %cst_6 = arith.constant 0.000000e+00 : f32
    %12 = vector.broadcast %cst_6 : f32 to vector<1x8x128xf32>
    %13 = arith.cmpf oge, %0, %12 : vector<1x8x128xf32>
    %cst_7 = arith.constant 1.000000e+00 : f32
    %14 = vector.broadcast %cst_7 : f32 to vector<1x8x128xf32>
    %15 = arith.select %13, %14, %5 : vector<1x8x128xi1>, vector<1x8x128xf32>
    %cst_8 = arith.constant 1.000000e+00 : f32
    %16 = vector.broadcast %cst_8 : f32 to vector<1x8x128xf32>
    %17 = arith.addf %16, %5 : vector<1x8x128xf32>
    %18 = arith.divf %15, %17 : vector<1x8x128xf32>
    %19 = arith.mulf %18, %1 : vector<1x8x128xf32>
    %cst_9 = arith.constant dense<0.000000e+00> : vector<1x128xf32>
    %20 = vector.multi_reduction <add>, %11, %cst_9 [1] : vector<1x8x128xf32> to vector<1x128xf32>
    %21 = vector.shape_cast %20 : vector<1x128xf32> to vector<1x1x128xf32>
    %cst_10 = arith.constant dense<0.000000e+00> : vector<1x128xf32>
    %22 = vector.multi_reduction <add>, %19, %cst_10 [1] : vector<1x8x128xf32> to vector<1x128xf32>
    %23 = vector.shape_cast %22 : vector<1x128xf32> to vector<1x1x128xf32>
    %cst_11 = arith.constant dense<0.000000e+00> : vector<1x128xf32>
    %24 = vector.multi_reduction <add>, %18, %cst_11 [1] : vector<1x8x128xf32> to vector<1x128xf32>
    %25 = vector.shape_cast %24 : vector<1x128xf32> to vector<1x1x128xf32>
    %cst_12 = arith.constant dense<0.000000e+00> : vector<1x128xf32>
    %26 = vector.multi_reduction <add>, %1, %cst_12 [1] : vector<1x8x128xf32> to vector<1x128xf32>
    %27 = vector.shape_cast %26 : vector<1x128xf32> to vector<1x1x128xf32>
    %28 = tpu.concatenate %21, %23, %25, %27 in 1 : vector<1x1x128xf32>, vector<1x1x128xf32>, vector<1x1x128xf32>, vector<1x1x128xf32> -> vector<1x4x128xf32>
    %29 = vector.shape_cast %28 : vector<1x4x128xf32> to vector<1x1x4x128xf32>
    %c0_13 = arith.constant 0 : index
    %c0_14 = arith.constant 0 : index
    %c0_15 = arith.constant 0 : index
    %c0_16 = arith.constant 0 : index
    %30 = vector.load %arg4[%c0_13, %c0_14, %c0_15, %c0_16] : memref<1x1x4x128xf32, #tpu.memory_space<vmem>>, vector<1x1x4x128xf32>
    tpu.vector_store %arg4[%c0_13, %c0_14, %c0_15, %c0_16], %29 {strides = array<i32>} : memref<1x1x4x128xf32, #tpu.memory_space<vmem>>, vector<1x1x4x128xf32>,
    return
  }
  func.func @transform_0(%arg0: i32, %arg1: i32) -> (i32, i32, i32) {
    %c0_i32 = arith.constant 0 : i32
    %c0_i32_0 = arith.constant 0 : i32
    return %arg0, %arg1, %c0_i32 : i32, i32, i32
  }
  func.func @transform_1(%arg0: i32, %arg1: i32) -> (i32, i32, i32) {
    %c0_i32 = arith.constant 0 : i32
    %c0_i32_0 = arith.constant 0 : i32
    return %arg0, %arg1, %c0_i32 : i32, i32, i32
  }
  func.func @transform_2(%arg0: i32, %arg1: i32) -> (i32, i32, i32, i32) {
    %c0_i32 = arith.constant 0 : i32
    %c0_i32_0 = arith.constant 0 : i32
    %c0_i32_1 = arith.constant 0 : i32
    return %arg0, %arg1, %c0_i32, %c0_i32_0 : i32, i32, i32, i32
  }
}

</mosaic_0001>

<bundles_post_ra>
// kernel: tpu_custom_call.1
= control target key start
LH: loop header
LB: loop body
LE: loop exit
PB: predicated region body
PF: predicated region fallthrough
CT: control target
= control target key end

     0   :  { %7 = vsyncpa [#allocation3], 0  ;;  %s867_s0 = inlined_call_operand.hbm [shape: f32[2,8,128], index: 0, kind: input, shape index: {}]   ;;  %s868_s1 = inlined_call_operand.hbm [shape: f32[2,8,128], index: 1, kind: input, shape index: {}]   ;;  %s869_s2 = inlined_call_operand.hbm [shape: f32[2,1,4,128], index: 2, kind: output, shape index: {}]  }
   0x1   :  { %9 = vsyncpa [#allocation3 + $0x1], 0 }
   0x2   :  { %10 = vsyncpa [#allocation6], 0 }
   0x3   :  { %12 = vsyncpa [#allocation6 + $0x1], 0 }
   0x4   :  { %13 = vsyncpa [#allocation4], 0 }
   0x5   :  { %15 = vsyncpa [#allocation4 + $0x1], 0  ;;  %s646_s9 = smov 0   ;;  %s648_s10 = smov 0  }
   0x6   :  { %s650_s11 = smov 0   ;;  %s652_s12 = smov 0  }
   0x7   :  { %s654_s13 = smov 0   ;;  %s656_s14 = smov 0  }
   0x8 LB: > { %s391_s15 = sadd.s32 4294967295, %s626_s14   ;;  %s392_s16 = sadd.s32 4294967294, %s626_s14   ;;  %s626_s14 = sphi %s656_s14, %s21_s14   ;;  %s622_s13 = sphi %s654_s13, %s889_s13   ;;  %s618_s12 = sphi %s652_s12, %s888_s12   ;;  %s614_s11 = sphi %s650_s11, %s887_s11   ;;  %s610_s10 = sphi %s648_s10, %s886_s10   ;;  %s606_s9 = sphi %s646_s9, %s885_s9  }
   0x9   : > { %s33_s17 = sadd.s32 1, %s622_s13  ;;  %s42_s18 = sadd.s32 1, %s614_s11 }
   0xa   : > { %p35_p0 = scmp.ge.s32.totalorder %s33_s17, 2  ;;  %p49_p1 = scmp.ne.s32.totalorder %s614_s11, %s610_s10 }
   0xb   : > { %p50_p2 = scmp.eq.s32.totalorder %s626_s14, 0  ;;  %p55_p3 = scmp.ne.s32.totalorder %s610_s10, %s606_s9 }
   0xc   : > { %s891_s17 = smov (%p35_p0, %s33_s17), 0  ;;  %p56_p5 = scmp.eq.s32.totalorder %s391_s15, 0 }
   0xd   : > { %p687_p4 = por %p50_p2, %p49_p1  ;;  %s37_s20 = ssub.s32 %s622_s13, %s891_s17 }
   0xe   : > { %p109_p6 = scmp.eq.s32.totalorder %s391_s15, 1  ;;  %p40_p7 = scmp.eq.s32.totalorder %s37_s20, 0 }
   0xf   : > { %p693_p8 = por %p56_p5, %p55_p3  ;;  %p115_p10 = scmp.eq.s32.totalorder %s392_s16, 1 }
  0x10   : > { %p697_p9 = por %p109_p6, %p49_p1  ;;  %p424_p13 = scmp.lt.s32.totalorder %s626_s14, 2 }
  0x11   : > { %s873_s21 = scalar_select %p693_p8, 1, 0 }
  0x12   : > { %s874_s22 = scalar_select %p697_p9, 1, 0 }
  0x13   : > { %s702_s23 = scalar_select %p40_p7, %s614_s11, %s42_s18  }
  0x14   : > { %p704_p11 = por %p115_p10, %p55_p3  ;;  %s711_s25 = sand.u32 1, %s614_s11  }
  0x15   : > { %s395_s26 = sshll.u32 %s711_s25, 3  ;;  %s396_s27 = sshll.u32 %s622_s13, 7 }
  0x16   : > { %s875_s24 = scalar_select %p704_p11, 1, 0 }
  0x17   : > { %s720_s30 = scalar_lea.hbm %s867_s0, %s396_s27  ;;  %s139_s3 = scalar_lea.vmem [#allocation2], %s395_s26 }
  0x18   : > { %s147_s4 = sshll.u32 %s139_s3, 4  ;;  %p728_p0 = pnand %p424_p13, %p687_p4  ;;  %s724_s4 = int_to_ptr.vmem [resolvable:$true] %s147_s4 }
  0x19   : > { %s136_s6 = scalar_lea.sflag [#allocation3], %s711_s25  ;;  %s480_s7 = scalar_lea.hbm %s720_s30, 128 }
  0x1a   : > { %p481_p3 = scmp.ne.s32.totalorder %s720_s30, %s480_s7  ;;  %p482_p5 = pneg %p728_p0 }
  0x1b   : > { %s485_s16 = scalar_lea.hbm %s867_s0, 256  ;;  %p486_p4 = scmp.lt.u32.totalorder %s720_s30, %s867_s0 }
  0x1c   : > { %p483_p6 = pnand %p482_p5, %p481_p3  ;;  %p487_p10 = scmp.lt.u32.totalorder %s485_s16, %s480_s7 }
  0x1d   : > { %p489_p12 = scmp.lt.u32.totalorder %s480_s7, %s720_s30 }
  0x1e   : > { %p484_p7 = pneg %p483_p6  ;;  %p488_p13 = por %p487_p10, %p486_p4 }
  0x20   : > { %p490_p1 = por %p489_p12, %p488_p13 }
  0x22   : > { %p491_p2 = pnand %p490_p1, %p484_p7 }
  0x24   : > { %494 = shalt.err (!%p491_p2)
}
  0x25   : > { %s495_s20 = scalar_lea.vmem %s724_s4, 128  ;;  %s628_s28 = smov [#allocation2]  }
  0x26   : > { %p496_p3 = scmp.ne.s32.totalorder %s724_s4, %s495_s20  ;;  %s500_s29 = sshll.u32 %s628_s28, 4  ;;  %s501_s29 = int_to_ptr.vmem [resolvable:$false] %s500_s29 }
  0x27   : > { %s502_s3 = scalar_lea.vmem %s501_s29, 256  ;;  %p503_p9 = scmp.lt.s32.totalorder %s724_s4, %s501_s29 }
  0x28   : > { %p498_p6 = pnand %p496_p3, %p482_p5  ;;  %p504_p4 = scmp.lt.s32.totalorder %s502_s3, %s495_s20 }
  0x2a   : > { %p499_p11 = pneg %p498_p6  ;;  %p505_p10 = por %p504_p4, %p503_p9 }
  0x2c   : > { %p506_p12 = pnand %p505_p10, %p499_p11 }
  0x2e   : > { %509 = shalt.err (!%p506_p12)
}
  0x2f   : > { %416 = dma.hbm_to_vmem [thread:$0]  (!%p728_p0), %s720_s30, 128, %s724_s4, %s136_s6  }
  0x30   : > { %p877_p1 = scmp.lt.s32.totalorder %s626_s14, 3  ;;  %p878_p2 = scmp.ge.s32.totalorder %s626_s14, 1 }
  0x31   : > { %s773_s16 = scalar_lea.hbm %s868_s1, %s396_s27  ;;  %s158_s18 = scalar_lea.vmem [#allocation5], %s395_s26 }
  0x32   : > { %p764_p7 = pnand %p878_p2, %p877_p1  ;;  %s166_s19 = sshll.u32 %s158_s18, 4  ;;  %s167_s19 = int_to_ptr.vmem [resolvable:$true] %s166_s19 }
  0x33   : > { %s155_s30 = scalar_lea.sflag [#allocation6], %s711_s25  ;;  %s510_s4 = scalar_lea.hbm %s773_s16, 128 }
  0x34   : > { %s879_s7 = scalar_select %p764_p7, 1, 0 }
  0x35   : > { %p511_p9 = scmp.ne.s32.totalorder %s773_s16, %s510_s4  ;;  %s515_s27 = scalar_lea.hbm %s868_s1, 256 }
  0x36   : > { %p516_p3 = scmp.lt.u32.totalorder %s773_s16, %s868_s1  ;;  %p517_p6 = scmp.lt.u32.totalorder %s515_s27, %s510_s4 }
  0x37   : > { %p513_p11 = pnand %p511_p9, %p482_p5  ;;  %p519_p10 = scmp.lt.u32.totalorder %s510_s4, %s773_s16 }
  0x38   : > { %p518_p4 = por %p517_p6, %p516_p3 }
  0x39   : > { %p514_p13 = pneg %p513_p11 }
  0x3a   : > { %p520_p12 = por %p519_p10, %p518_p4 }
  0x3c   : > { %p521_p1 = pnand %p520_p12, %p514_p13 }
  0x3e   : > { %524 = shalt.err (!%p521_p1)
}
  0x3f   : > { %s525_s25 = scalar_lea.vmem %s167_s19, 128  ;;  %s629_s26 = smov [#allocation5]  }
  0x40   : > { %p526_p2 = scmp.ne.s32.totalorder %s167_s19, %s525_s25  ;;  %s530_s3 = sshll.u32 %s629_s26, 4  ;;  %s531_s3 = int_to_ptr.vmem [resolvable:$false] %s530_s3 }
  0x41   : > { %s532_s8 = scalar_lea.vmem %s531_s3, 256  ;;  %p533_p8 = scmp.lt.s32.totalorder %s167_s19, %s531_s3 }
  0x42   : > { %p528_p9 = pnand %p526_p2, %p482_p5  ;;  %p534_p7 = scmp.lt.s32.totalorder %s532_s8, %s525_s25 }
  0x44   : > { %p529_p11 = pneg %p528_p9  ;;  %p535_p3 = por %p534_p7, %p533_p8 }
  0x46   : > { %p536_p6 = pnand %p535_p3, %p529_p11 }
  0x48   : > { %539 = shalt.err (!%p536_p6)
}
  0x49   : > { %419 = dma.hbm_to_vmem [thread:$0]  (!%p728_p0), %s773_s16, 128, %s167_s19, %s155_s30  }
  0x4a   : > { %p880_p13 = scmp.ne.s32.totalorder %s879_s7, 0 }
  0x4b   : > { %s800_s15 = sand.u32 (!%p880_p13), 1, %s610_s10   ;;  %p881_p5 = scmp.ne.s32.totalorder (!%p880_p13), %s873_s21, 0 }
  0x4c   : > { %175 = sbr.rel (%p880_p13) target bundleno = 151 (0x97), region = 28  ;;  %s400_s18 = sshll.u32 (!%p880_p13), %s800_s15, 3 }
  0x4d   : > { %s178_s4 = scalar_lea.sflag (!%p880_p13), [#allocation3], %s800_s15  ;;  %s181_s6 = scalar_lea.vmem (!%p880_p13), [#allocation2], %s400_s18 }
  0x53   : > { %593 = dma.done.wait (%p881_p5), %s178_s4, 128  }
  0x54   : > { %595 = vsyncadd (%p881_p5), %s178_s4, 4294967168  ;;  %s187_s5 = scalar_lea.sflag [#allocation6], %s800_s15  ;;  %s190_s16 = scalar_lea.vmem [#allocation5], %s400_s18 }
  0x55   : > { %597 = dma.done.wait (%p881_p5), %s187_s5, 128  }
  0x56   : > { %599 = vsyncadd (%p881_p5), %s187_s5, 4294967168  ;;  %v216_v0 = vld [vmem:[%s181_s6] sm:$0xff]  ;;  %v217_v7 = vld [vmem:[%s190_s16] sm:$0xff]  ;;  %s402_s21 = sshll.u32 %s800_s15, 2  ;;  %vm265_vm2 = vcmask 1040384   ;;  %vm267_vm3 = vcmask 1041408  }
  0x57   : > { %v218_v1 = vand.u32 2147483647, %v216_v0  ;;  %v222_v8 = vmax.f32 %v216_v0, 0.0  ;;  %v223_v10 = vmul.f32 %v217_v7, %v216_v0  ;;  %vm235_vm0 = vcmp.ge.f32.partialorder %v216_v0, 0.0  ;;  %s215_s7 = scalar_lea.vmem [#allocation7], %s402_s21  ;;  %s404_s30 = sshll.u32 %s618_s12, 6 }
  0x58   : > { %v259_v12 = vrot.slane %v217_v7, 4  ;;  %s287_s19 = sshll.u32 %s215_s7, 4  ;;  %vm269_vm4 = vcmask 1042432   ;;  %s820_s28 = scalar_lea.hbm %s869_s2, %s404_s30  ;;  %s815_s19 = int_to_ptr.vmem [resolvable:$true] %s287_s19 }
  0x59   : > { %v219_v2 = vsub.f32 0.0, %v218_v1  ;;  %v224_v16 = vsub.f32 %v222_v8, %v223_v10  ;;  %s273_s29 = scalar_lea.sflag [#allocation4], %s800_s15  ;;  %s540_s25 = scalar_lea.vmem %s815_s19, 64 }
  0x5a   : > { %v260_v17 = vadd.f32 %v259_v12, %v217_v7  ;;  %p541_p8 = scmp.ne.s32.totalorder %s815_s19, %s540_s25  ;;  %p882_p0 = scmp.ne.s32.totalorder %s874_s22, 0 }
  0x5b   : > { %v220_v3 = vmul.f32 1.442695, %v219_v2  ;;  %s630_s12 = smov [#allocation7]  }
  0x5c   : > { %v261_v25 = vrot.slane %v260_v17, 2  ;;  %p542_p7 = pnand %p541_p8, %p882_p0  ;;  %s544_s26 = sshll.u32 %s630_s12, 4  ;;  %s545_s26 = int_to_ptr.vmem [resolvable:$false] %s544_s26 }
  0x5d   : > { %474 = vpow2.f32 %v220_v3  ;;  %s546_s3 = scalar_lea.vmem %s545_s26, 128  ;;  %p547_p10 = scmp.lt.s32.totalorder %s815_s19, %s545_s26 }
  0x5e   : > { %v262_v32 = vadd.f32 %v261_v25, %v260_v17  ;;  %p543_p4 = pneg %p542_p7  ;;  %p548_p12 = scmp.lt.s32.totalorder %s546_s3, %s540_s25 }
  0x60   : > { %v263_v39 = vrot.slane %v262_v32, 1  ;;  %p549_p1 = por %p548_p12, %p547_p10 }
  0x62   : > { %v264_v45 = vadd.f32 %v263_v39, %v262_v32  ;;  %p550_p2 = pnand %p549_p1, %p543_p4 }
  0x67   : > { %v475_v4 = vpop.eup %474 }
  0x68   : > { %v225_v5 = vadd.f32 1.0, %v475_v4  ;;  %v228_v6 = vmul.f32 -0.5, %v475_v4  ;;  %v231_v11 = vand.u32 2147483647, %v475_v4  ;;  %v236_v14 = vsel %vm235_vm0, 1.0, %v475_v4 }
  0x6a   : > { %476 = vlog2.f32 %v225_v5  ;;  %v229_v9 = vadd.f32 1.0, %v228_v6  ;;  %vm232_vm1 = vcmp.lt.f32.partialorder %v231_v11, 0.0004427343 }
  0x6b   : > { %478 = vrcp.f32 %v225_v5 }
  0x6c   : > { %v230_v13 = vmul.f32 %v475_v4, %v229_v9 }
  0x74   : > { %v477_v15 = vpop.eup %476 }
  0x75   : > { %v479_v18 = vpop.eup %478  ;;  %v227_v19 = vmul.f32 0.6931472, %v477_v15 }
  0x76   : > { %v239_v20 = vmul.f32 %v479_v18, %v236_v14 }
  0x77   : > { %v233_v21 = vsel %vm232_vm1, %v230_v13, %v227_v19 }
  0x78   : > { %v234_v22 = vadd.f32 %v233_v21, %v224_v16  ;;  %v240_v23 = vmul.f32 %v239_v20, %v217_v7  ;;  %v253_v24 = vrot.slane %v239_v20, 4 }
  0x7a   : > { %v241_v26 = vrot.slane %v234_v22, 4  ;;  %v247_v27 = vrot.slane %v240_v23, 4  ;;  %v254_v28 = vadd.f32 %v253_v24, %v239_v20 }
  0x7c   : > { %v242_v29 = vadd.f32 %v241_v26, %v234_v22  ;;  %v248_v30 = vadd.f32 %v247_v27, %v240_v23  ;;  %v255_v31 = vrot.slane %v254_v28, 2 }
  0x7e   : > { %v243_v33 = vrot.slane %v242_v29, 2  ;;  %v249_v34 = vrot.slane %v248_v30, 2  ;;  %v256_v35 = vadd.f32 %v255_v31, %v254_v28 }
  0x80   : > { %v244_v36 = vadd.f32 %v243_v33, %v242_v29  ;;  %v250_v37 = vadd.f32 %v249_v34, %v248_v30  ;;  %v257_v38 = vrot.slane %v256_v35, 1 }
  0x82   : > { %v245_v40 = vrot.slane %v244_v36, 1  ;;  %v251_v41 = vrot.slane %v250_v37, 1  ;;  %v258_v42 = vadd.f32 %v257_v38, %v256_v35 }
  0x84   : > { %v246_v43 = vadd.f32 %v245_v40, %v244_v36  ;;  %v252_v44 = vadd.f32 %v251_v41, %v250_v37 }
  0x86   : > { %v266_v46 = vsel %vm265_vm2, %v246_v43, %v252_v44 }
  0x87   : > { %v268_v47 = vsel %vm267_vm3, %v266_v46, %v258_v42 }
  0x88   : > { %v270_v48 = vsel %vm269_vm4, %v268_v47, %v264_v45 }
  0x89   : > { %271 = vst [vmem:[%s215_s7] sm:$0xf] %v270_v48 }
  0x8a   : > { %553 = shalt.err (!%p550_p2)
}
  0x8b   : > { %s554_s8 = scalar_lea.hbm %s820_s28, 64  ;;  %s558_s4 = scalar_lea.hbm %s869_s2, 128 }
  0x8c   : > { %p555_p9 = scmp.ne.s32.totalorder %s820_s28, %s554_s8  ;;  %p559_p6 = scmp.lt.u32.totalorder %s820_s28, %s869_s2 }
  0x8d   : > { %p560_p13 = scmp.lt.u32.totalorder %s558_s4, %s554_s8  ;;  %p562_p8 = scmp.lt.u32.totalorder %s554_s8, %s820_s28 }
  0x8e   : > { %p556_p11 = pnand %p555_p9, %p882_p0 }
  0x8f   : > { %p561_p5 = por %p560_p13, %p559_p6 }
  0x90   : > { %p557_p3 = pneg %p556_p11 }
  0x91   : > { %p563_p7 = por %p562_p8, %p561_p5 }
  0x93   : > { %p564_p4 = pnand %p563_p7, %p557_p3 }
  0x95   : > { %567 = shalt.err (!%p564_p4)
}
  0x96   : > { %411 = dma.vmem_to_hbm [thread:$0]  (%p882_p0), %s815_s19, 64, %s820_s28, %s273_s29  }
  0x97 PF: > { %s299_s16 = sand.u32 1, %s606_s9   ;;  %p883_p10 = scmp.ne.s32.totalorder %s875_s24, 0 }
  0x98   : > { %p884_p12 = scmp.ge.s32.totalorder %s626_s14, 2  ;;  %s300_s21 = scalar_lea.sflag [#allocation4], %s299_s16 }
  0x9a   : > { %p421_p1 = pnand %p884_p12, %p883_p10 }
  0x9c   : > { %601 = dma.done.wait (!%p421_p1), %s300_s21, 64  }
  0x9d   : > { %603 = vsyncadd (!%p421_p1), %s300_s21, 4294967232  ;;  %s21_s14 = sadd.s32 1, %s626_s14   ;;  %s885_s9 = smov %s610_s10 }
  0x9e   : > { %p18_p2 = scmp.ge.s32.totalorder %s21_s14, 4   ;;  %s886_s10 = smov %s614_s11 }
  0x9f   : > { %s887_s11 = smov %s702_s23  ;;  %s888_s12 = smov %s622_s13 }
  0xa0   : > { %s889_s13 = smov %s891_s17  ;;  %20 = sbr.rel (!%p18_p2) target bundleno = 8 (0x8), region = 86 }
  0xa7   :  { %305 = vsyncpa [#allocation3], 1 }
  0xa8   :  { %307 = vsyncpa [#allocation3 + $0x1], 1 }
  0xa9   :  { %308 = vsyncpa [#allocation6], 1 }
  0xaa   :  { %310 = vsyncpa [#allocation6 + $0x1], 1 }
  0xab   :  { %311 = vsyncpa [#allocation4], 1 }
  0xac   :  { %313 = vsyncpa [#allocation4 + $0x1], 1 }

</bundles_post_ra>
